<compile_context>
chip_gen: v7x
topology: tpu7x:2x2x1
jax: 0.10.0
libtpu: 0.0.40
codegen_flags: <defaults>
</compile_context>

<pallas_src>
import functools

import jax
import jax.numpy as jnp
from jax.experimental import pallas as pl
from jax.experimental.pallas import tpu as pltpu

_SUBLANE = 8


def _round_up(x, m):
    return (x + m - 1) // m * m


def _categorical_kernel(x_ref, w_ref, b_ref, logits_ref, probs_ref):
    # x_ref: [tB, F]   (last row-block may contain garbage OOB rows; softmax is
    #                   row-wise and those output rows are masked on store)
    # w_ref: [F, O]    VMEM-resident across all grid steps
    # b_ref: [1, O]    VMEM-resident bias row
    x = x_ref[...]
    w = w_ref[...]
    logits = jnp.dot(x, w, preferred_element_type=jnp.float32) + b_ref[...]

    # torch.distributions.Categorical(logits=...) stores logits normalized:
    # logits - logsumexp(logits, -1, keepdims=True); probs = softmax(logits).
    m = jnp.max(logits, axis=-1, keepdims=True)
    shifted = logits - m
    e = jnp.exp(shifted)
    s = jnp.sum(e, axis=-1, keepdims=True)
    norm_logits = shifted - jnp.log(s)
    probs = e / s  # exact divide; cost hidden under output DMA

    logits_ref[...] = norm_logits.astype(logits_ref.dtype)
    probs_ref[...] = probs.astype(probs_ref.dtype)


@functools.partial(jax.jit, static_argnames=("block_b",))
def neural_categorical_forward(features, weight_t, bias, *, block_b=2048):
    """features: [B, F] f32; weight_t: [F, O] f32; bias: [O] (or [1, O]) f32.

    Returns (normalized_logits, probs), each [B, O] f32 -- the state of
    torch.distributions.Categorical(logits=features @ W^T + b).
    """
    B, F = features.shape
    Fw, O = weight_t.shape
    assert Fw == F, "weight_t must be [F, O]"
    dtype = jnp.float32

    # Sublane-aligned row tile; grid handles the ragged last block itself.
    tB = min(block_b, _round_up(B, _SUBLANE))
    tB = _round_up(tB, _SUBLANE)
    grid = (pl.cdiv(B, tB),)

    bias_row = jnp.reshape(bias, (1, O)).astype(dtype)

    out_shape = (
        jax.ShapeDtypeStruct((B, O), dtype),
        jax.ShapeDtypeStruct((B, O), dtype),
    )
    cost = pl.CostEstimate(
        flops=2 * B * F * O,
        transcendentals=B * O,  # exp tile (log/div are per-row, negligible)
        bytes_accessed=4 * (B * F + F * O + O + 2 * B * O),
    )

    norm_logits, probs = pl.pallas_call(
        _categorical_kernel,
        out_shape=out_shape,
        grid=grid,
        in_specs=[
            pl.BlockSpec((tB, F), lambda i: (i, 0)),   # row-tiled activations
            pl.BlockSpec((F, O), lambda i: (0, 0)),    # VMEM-resident weights
            pl.BlockSpec((1, O), lambda i: (0, 0)),    # VMEM-resident bias
        ],
        out_specs=[
            pl.BlockSpec((tB, O), lambda i: (i, 0)),
            pl.BlockSpec((tB, O), lambda i: (i, 0)),
        ],
        compiler_params=pltpu.CompilerParams(
            dimension_semantics=("parallel",),
        ),
        cost_estimate=cost,
    )(features.astype(dtype), weight_t.astype(dtype), bias_row)

    return norm_logits, probs


def _orthogonal_init(key, rows, cols, gain):
    """Deterministic orthogonal init (mirrors nn.init.orthogonal_)."""
    a = jax.random.normal(key, (max(rows, cols), min(rows, cols)), jnp.float32)
    q, r = jnp.linalg.qr(a)
    d = jnp.sign(jnp.diagonal(r))
    q = q * d[None, :]
    if rows < cols:
        q = q.T
    return gain * q[:rows, :cols]


def _reference(x, weight_t, bias):
    logits = jnp.dot(x, weight_t, precision=jax.lax.Precision.HIGHEST) + bias
    lse = jax.scipy.special.logsumexp(logits, axis=-1, keepdims=True)
    return logits - lse, jax.nn.softmax(logits, axis=-1)


if __name__ == "__main__":
    # Module config: num_features -> num_outputs
    num_features = 32
    num_outputs = 16

    key = jax.random.PRNGKey(0)
    k_x, k_x2, k_w = jax.random.split(key, 3)

    # Parameters matching nn.Linear(num_features, num_outputs) with
    # orthogonal_(gain=0.01) weight and zero bias.  Weight stored transposed.
    weight = _orthogonal_init(k_w, num_outputs, num_features, gain=0.01)  # [O, F]
    weight_t = jnp.asarray(weight.T, jnp.float32)                         # [F, O]
    bias = jnp.zeros((num_outputs,), jnp.float32)

    # --- Case 1: small batch, single grid step -------------------------------
    x = jax.random.normal(k_x, (8, num_features), jnp.float32)
    norm_logits, probs = neural_categorical_forward(x, weight_t, bias)
    jax.block_until_ready((norm_logits, probs))

    ref_norm, ref_probs = _reference(x, weight_t, bias)
    assert norm_logits.shape == (8, num_outputs)
    assert probs.shape == (8, num_outputs)
    assert jnp.allclose(norm_logits, ref_norm, atol=1e-4), "logits mismatch"
    assert jnp.allclose(probs, ref_probs, atol=1e-4), "probs mismatch"
    assert jnp.allclose(jnp.sum(probs, axis=-1), 1.0, atol=1e-3)

    # --- Case 2: multi-step grid with a ragged last block (40 % 16 != 0) -----
    x2 = jax.random.normal(k_x2, (40, num_features), jnp.float32)
    norm_logits2, probs2 = neural_categorical_forward(x2, weight_t, bias, block_b=16)
    jax.block_until_ready((norm_logits2, probs2))

    ref_norm2, ref_probs2 = _reference(x2, weight_t, bias)
    assert norm_logits2.shape == (40, num_outputs)
    assert jnp.allclose(norm_logits2, ref_norm2, atol=1e-4), "batched logits mismatch"
    assert jnp.allclose(probs2, ref_probs2, atol=1e-4), "batched probs mismatch"
    assert jnp.allclose(jnp.sum(probs2, axis=-1), 1.0, atol=1e-3)

    # TODO(synk): Categorical.sample()/log_prob()/entropy() are not implemented
    # here; the kernel returns the distribution's state (normalized logits and
    # probs), matching what Categorical(logits=...) stores.
    print("KERNEL_OK")
</pallas_src>

<mosaic_0001>
module attributes {stable_mosaic.version = 11 : i64} {
  func.func @_categorical_kernel(%arg0: i32, %arg1: memref<8x32xf32, #tpu.memory_space<vmem>>, %arg2: memref<32x16xf32, #tpu.memory_space<vmem>>, %arg3: memref<1x16xf32, #tpu.memory_space<vmem>>, %arg4: memref<8x16xf32, #tpu.memory_space<vmem>>, %arg5: memref<8x16xf32, #tpu.memory_space<vmem>>) attributes {dimension_semantics = [#tpu.dimension_semantics<parallel>], iteration_bounds = array<i64: 1>, scalar_prefetch = 0 : i64, scratch_operands = 0 : i64, tpu.core_type = #tpu.core_type<tc>, window_params = [{transform_indices = @transform_0, window_bounds = array<i64: 8, 32>}, {pipeline_mode = #tpu.pipeline_mode<synchronous>, transform_indices = @transform_1, window_bounds = array<i64: 32, 16>}, {pipeline_mode = #tpu.pipeline_mode<synchronous>, transform_indices = @transform_2, window_bounds = array<i64: 1, 16>}, {transform_indices = @transform_3, window_bounds = array<i64: 8, 16>}, {transform_indices = @transform_4, window_bounds = array<i64: 8, 16>}]} {
    %c0 = arith.constant 0 : index
    %c0_0 = arith.constant 0 : index
    %0 = vector.load %arg1[%c0, %c0_0] : memref<8x32xf32, #tpu.memory_space<vmem>>, vector<8x32xf32>
    %c0_1 = arith.constant 0 : index
    %c0_2 = arith.constant 0 : index
    %1 = vector.load %arg2[%c0_1, %c0_2] : memref<32x16xf32, #tpu.memory_space<vmem>>, vector<32x16xf32>
    %cst = arith.constant dense<0.000000e+00> : vector<8x16xf32>
    %2 = tpu.matmul %0, %1, %cst {dimension_numbers = #tpu.dot_dimension_numbers<[1], [0], [0], [1], [0, 0, 1, 1], [], []>} : vector<8x32xf32>, vector<32x16xf32>, vector<8x16xf32> -> vector<8x16xf32>
    %c0_3 = arith.constant 0 : index
    %c0_4 = arith.constant 0 : index
    %3 = vector.load %arg3[%c0_3, %c0_4] : memref<1x16xf32, #tpu.memory_space<vmem>>, vector<1x16xf32>
    %4 = vector.broadcast %3 : vector<1x16xf32> to vector<8x16xf32>
    %5 = arith.addf %2, %4 : vector<8x16xf32>
    %cst_5 = arith.constant dense<0xFF800000> : vector<8xf32>
    %6 = vector.multi_reduction <maximumf>, %5, %cst_5 [1] : vector<8x16xf32> to vector<8xf32>
    %7 = vector.shape_cast %6 : vector<8xf32> to vector<8x1xf32>
    %8 = vector.broadcast %7 : vector<8x1xf32> to vector<8x16xf32>
    %9 = arith.subf %5, %8 : vector<8x16xf32>
    %10 = math.exp %9 : vector<8x16xf32>
    %cst_6 = arith.constant dense<0.000000e+00> : vector<8xf32>
    %11 = vector.multi_reduction <add>, %10, %cst_6 [1] : vector<8x16xf32> to vector<8xf32>
    %12 = vector.shape_cast %11 : vector<8xf32> to vector<8x1xf32>
    %13 = math.log %12 : vector<8x1xf32>
    %14 = vector.broadcast %13 : vector<8x1xf32> to vector<8x16xf32>
    %15 = arith.subf %9, %14 : vector<8x16xf32>
    %16 = vector.broadcast %12 : vector<8x1xf32> to vector<8x16xf32>
    %17 = arith.divf %10, %16 : vector<8x16xf32>
    %c0_7 = arith.constant 0 : index
    %c0_8 = arith.constant 0 : index
    %18 = vector.load %arg4[%c0_7, %c0_8] : memref<8x16xf32, #tpu.memory_space<vmem>>, vector<8x16xf32>
    tpu.vector_store %arg4[%c0_7, %c0_8], %15 {strides = array<i32>} : memref<8x16xf32, #tpu.memory_space<vmem>>, vector<8x16xf32>,
    %c0_9 = arith.constant 0 : index
    %c0_10 = arith.constant 0 : index
    %19 = vector.load %arg5[%c0_9, %c0_10] : memref<8x16xf32, #tpu.memory_space<vmem>>, vector<8x16xf32>
    tpu.vector_store %arg5[%c0_9, %c0_10], %17 {strides = array<i32>} : memref<8x16xf32, #tpu.memory_space<vmem>>, vector<8x16xf32>,
    return
  }
  func.func @transform_0(%arg0: i32) -> (i32, i32) {
    %c0_i32 = arith.constant 0 : i32
    %c0_i32_0 = arith.constant 0 : i32
    return %arg0, %c0_i32 : i32, i32
  }
  func.func @transform_1(%arg0: i32) -> (i32, i32) {
    %c0_i32 = arith.constant 0 : i32
    %c0_i32_0 = arith.constant 0 : i32
    %c0_i32_1 = arith.constant 0 : i32
    return %c0_i32, %c0_i32_0 : i32, i32
  }
  func.func @transform_2(%arg0: i32) -> (i32, i32) {
    %c0_i32 = arith.constant 0 : i32
    %c0_i32_0 = arith.constant 0 : i32
    %c0_i32_1 = arith.constant 0 : i32
    return %c0_i32, %c0_i32_0 : i32, i32
  }
  func.func @transform_3(%arg0: i32) -> (i32, i32) {
    %c0_i32 = arith.constant 0 : i32
    %c0_i32_0 = arith.constant 0 : i32
    return %arg0, %c0_i32 : i32, i32
  }
  func.func @transform_4(%arg0: i32) -> (i32, i32) {
    %c0_i32 = arith.constant 0 : i32
    %c0_i32_0 = arith.constant 0 : i32
    return %arg0, %c0_i32 : i32, i32
  }
}

</mosaic_0001>

<bundles_post_ra>
// kernel: neural_categorical_forward.1
= control target key start
LH: loop header
LB: loop body
LE: loop exit
PB: predicated region body
PF: predicated region fallthrough
CT: control target
= control target key end

     0   :  { %10 = vsyncpa [#allocation3], 0  ;;  %v232_v3 = vmov 0.0|0.0   ;;  %vm233_vm0 = vmmov 0   ;;  %v234_v6 = vmov 0.0   ;;  %s308_s0 = inlined_call_operand.vmem [shape: f32[8,32], index: 0, kind: input, shape index: {}]   ;;  %s309_s1 = inlined_call_operand.vmem [shape: f32[32,16], index: 1, kind: input, shape index: {}]   ;;  %s310_s2 = inlined_call_operand.vmem [shape: f32[1,16], index: 2, kind: input, shape index: {}]   ;;  %s311_s3 = inlined_call_operand.hbm [shape: f32[8,16], index: 3, kind: output, shape index: {0}]   ;;  %s312_s4 = inlined_call_operand.hbm [shape: f32[8,16], index: 4, kind: output, shape index: {1}]  }
   0x1   :  { %v19_v0 = vld [vmem:[%s309_s1] sm:$0xff]  ;;  %v20_v1 = vld [vmem:[%s309_s1 + $0x8] sm:$0xff]  ;;  %v21_v2 = vld [vmem:[%s309_s1 + $0x10] sm:$0xff]  ;;  %167 = vmatprep.subr.bf16.mxu0 %v232_v3  ;;  %164 = vmatprep.mubr.msk.f32.mxu0 %vm233_vm0, %v234_v6 }
   0x2   :  { %v168_v4 = vpack.c.bf16 %v20_v1, %v19_v0  ;;  %v22_v5 = vld [vmem:[%s309_s1 + $0x18] sm:$0xff] }
   0x3   :  { %11 = vsyncpa [#allocation5], 0  ;;  %v171_v7 = vpack.c.bf16 %v22_v5, %v21_v2  ;;  %v18_v8 = vld [vmem:[%s308_s0] sm:$0xff]  ;;  %vm30_vm1 = vcmask 261120   ;;  %vm104_vm2 = vcmask 130048   ;;  %s235_s0 = smov [#allocation4]  }
   0x4   :  { %169 = vmatpush3.bf16.msra.mxu0 %v168_v4  ;;  %v149_v9 = vld [vmem:[%s310_s2] ss:$0 sm:$0xff]  ;;  %s137_s1 = sshll.u32 %s235_s0, 4  ;;  %s236_s2 = smov [#allocation2]   ;;  %s138_s1 = int_to_ptr.vmem [resolvable:$true] %s137_s1 }
   0x5   :  { %170 = vmatprep.subr.bf16.mxu0 %v232_v3  ;;  %s127_s27 = sshll.u32 %s236_s2, 4  ;;  %s184_s28 = scalar_lea.vmem %s138_s1, 128  ;;  %s128_s27 = int_to_ptr.vmem [resolvable:$true] %s127_s27 }
   0x6   :  { %p185_p0 = scmp.ne.s32.totalorder %s138_s1, %s184_s28  ;;  %p189_p1 = scmp.lt.s32.totalorder %s138_s1, %s138_s1 }
   0x7   :  { %p190_p2 = scmp.lt.s32.totalorder %s184_s28, %s184_s28 }
   0x8   :  { %172 = vmatpush3.bf16.msra.mxu0 %v171_v7 }
   0x9   :  { %p191_p3 = por %p190_p2, %p189_p1 }
   0xb   :  { %165 = vmatmul.mubr.msk.f32.vlgmr.msra.gmra.mrb[0].mxu0 %vm30_vm1, %v18_v8  ;;  %p192_p4 = pnand %p191_p3, %p185_p0 }
  0xde   :  { %v100_v10 = vpop.f32.mrb[0].mxu0 }
  0xdf   :  { %v101_v11 = vadd.f32 %v149_v9, %v100_v10  ;;  %v166_v12 = vpop.f32.mrb[1].mxu0 }
  0xe1   :  { %v105_v13 = vsel %vm104_vm2, %v101_v11, -inf }
  0xe2   :  { %106 = vmax.xlane.f32.xlu0 %v105_v13 }
 0x16f   :  { %v107_v14 = vpop.xlane.xlu0 %106 }
 0x170   :  { %v108_v15 = vsub.f32 %v101_v11, %v107_v14 }
 0x172   :  { %v109_v16 = vmul.f32 1.442695, %v108_v15 }
 0x174   :  { %178 = vpow2.f32 %v109_v16 }
 0x17e   :  { %v179_v17 = vpop.eup %178 }
 0x17f   :  { %v111_v18 = vsel %vm104_vm2, %v179_v17, 0.0 }
 0x180   :  { %112 = vadd.xlane.f32.xlu0 %v111_v18 }
 0x20d   :  { %v113_v19 = vpop.xlane.xlu0 %112 }
 0x20e   :  { %180 = vlog2.f32 %v113_v19 }
 0x20f   :  { %182 = vrcp.f32 %v113_v19 }
 0x218   :  { %v181_v20 = vpop.eup %180 }
 0x219   :  { %v183_v21 = vpop.eup %182  ;;  %v115_v22 = vmul.f32 0.6931472, %v181_v20 }
 0x21a   :  { %v118_v23 = vmul.f32 %v183_v21, %v179_v17 }
 0x21b   :  { %v116_v24 = vsub.f32 %v108_v15, %v115_v22 }
 0x21c   :  { %120 = vst.msk [vmem:[#allocation4] sm:$0xff] %vm104_vm2, %v118_v23 }
 0x21d   :  { %119 = vst.msk [vmem:[#allocation2] sm:$0xff] %vm104_vm2, %v116_v24 }
 0x21e   :  { %195 = shalt.err (!%p192_p4)
}
 0x21f   :  { %s196_s5 = scalar_lea.hbm %s312_s4, 128 }
 0x220   :  { %p197_p5 = scmp.ne.s32.totalorder %s312_s4, %s196_s5  ;;  %p200_p6 = scmp.lt.u32.totalorder %s196_s5, %s312_s4 }
 0x222   :  { %p202_p7 = pnand %p200_p6, %p197_p5 }
 0x224   :  { %205 = shalt.err (!%p202_p7)
}
 0x225   :  { %140 = dma.vmem_to_hbm [thread:$0]  %s138_s1, 128, %s312_s4, [#allocation5]  }
 0x226   :  { %s206_s12 = scalar_lea.vmem %s128_s27, 128  ;;  %p211_p9 = scmp.lt.s32.totalorder %s128_s27, %s128_s27 }
 0x227   :  { %p207_p8 = scmp.ne.s32.totalorder %s128_s27, %s206_s12  ;;  %p212_p10 = scmp.lt.s32.totalorder %s206_s12, %s206_s12 }
 0x229   :  { %p213_p11 = por %p212_p10, %p211_p9 }
 0x22b   :  { %p214_p12 = pnand %p213_p11, %p207_p8 }
 0x22d   :  { %217 = shalt.err (!%p214_p12)
}
 0x22e   :  { %s218_s15 = scalar_lea.hbm %s311_s3, 128 }
 0x22f   :  { %p219_p13 = scmp.ne.s32.totalorder %s311_s3, %s218_s15  ;;  %p222_p0 = scmp.lt.u32.totalorder %s218_s15, %s311_s3 }
 0x231   :  { %p224_p1 = pnand %p222_p0, %p219_p13 }
 0x233   :  { %227 = shalt.err (!%p224_p1)
}
 0x234   :  { %130 = dma.vmem_to_hbm [thread:$0]  %s128_s27, 128, %s311_s3, [#allocation3]  }
 0x235   :  { %228 = dma.done.wait [#allocation3], 128  }
 0x236   :  { %229 = vsyncadd [#allocation3], 4294967168 }
 0x237   :  { %230 = dma.done.wait [#allocation5], 128  }
 0x238   :  { %231 = vsyncadd [#allocation5], 4294967168 }
 0x239   :  { %147 = vsyncpa [#allocation3], 1 }
 0x23a   :  { %148 = vsyncpa [#allocation5], 1 }

</bundles_post_ra>
